<compile_context>
chip_gen: v7x
topology: tpu7x:2x2x1
jax: 0.10.0
libtpu: 0.0.40
codegen_flags: <defaults>
</compile_context>

<pallas_src>
import functools

import jax
import jax.numpy as jnp
from jax.experimental import pallas as pl
from jax.experimental.pallas import tpu as pltpu

NUM_FEATURES = 32   # stand-in for config.num_features
HIDDEN1 = 16
HIDDEN2 = 16
OUT = 1

# Batch tile. Weights total ~3 KB, so per-step VMEM is dominated by the x tile
# ((1024, 32) f32 = 128 KB, double-buffered ~256 KB) -- trivially within budget
# on v5e/v6e (128 MiB) and v7x (64 MiB).
MAX_TILE_B = 1024


def _round_up(n, m):
    return (n + m - 1) // m * m


def mlp_kernel(x_ref, w1_ref, b1_ref, w2_ref, b2_ref, w3_ref, b3_ref, o_ref):
    # x_ref: (TILE_B, F). One transpose (XLU) puts the batch into the lane
    # dimension; every downstream matmul, bias add, activation and the final
    # store are then lane-major, so the OUT=1 result is a dense (1, TILE_B)
    # row (unmasked vst) instead of a sublane-strided (TILE_B, 1) column.
    xt = x_ref[...].T                                                # (F, TILE_B)

    # fc1 + ReLU  (weights in native PyTorch (out, in) layout)
    h1 = jnp.dot(w1_ref[...], xt, preferred_element_type=jnp.float32)
    h1 = jnp.maximum(h1 + b1_ref[...], 0.0)                          # (H1, TILE_B)

    # fc2 + ReLU
    h2 = jnp.dot(w2_ref[...], h1, preferred_element_type=jnp.float32)
    h2 = jnp.maximum(h2 + b2_ref[...], 0.0)                          # (H2, TILE_B)

    # fc3 + Sigmoid (stable form: sigmoid(x) == 0.5*(tanh(x/2)+1), tanh -> EUP)
    logits = jnp.dot(w3_ref[...], h2, preferred_element_type=jnp.float32)
    logits = logits + b3_ref[...]                                    # (OUT, TILE_B)
    o_ref[0] = (0.5 * (jnp.tanh(0.5 * logits) + 1.0)).astype(o_ref.dtype)


@functools.partial(jax.jit, static_argnames=("max_tile_b",))
def simple_nn_forward(x, params, *, max_tile_b=MAX_TILE_B):
    """x: [B, NUM_FEATURES] float32. params: PyTorch-layout weights/biases."""
    B, F = x.shape
    tile_b = min(max_tile_b, _round_up(B, 8))
    b_pad = _round_up(B, tile_b)
    num_tiles = b_pad // tile_b
    if b_pad != B:
        x = jnp.pad(x, ((0, b_pad - B), (0, 0)))

    # Weights stay in PyTorch (out, in) layout; biases become (out, 1) columns
    # (broadcast over the lane/batch dimension inside the kernel).
    w1, w2, w3 = params["w1"], params["w2"], params["w3"]
    b1 = params["b1"].reshape(HIDDEN1, 1)
    b2 = params["b2"].reshape(HIDDEN2, 1)
    b3 = params["b3"].reshape(OUT, 1)

    # Constant block index across the grid -> weights/biases stay resident in
    # VMEM (no re-DMA per batch tile).
    resident = lambda shape: pl.BlockSpec(shape, lambda i: (0, 0))

    out = pl.pallas_call(
        mlp_kernel,
        out_shape=jax.ShapeDtypeStruct((num_tiles, 1, tile_b), jnp.float32),
        grid=(num_tiles,),
        in_specs=[
            pl.BlockSpec((tile_b, F), lambda i: (i, 0)),   # batch-tiled, pipelined
            resident((HIDDEN1, F)), resident((HIDDEN1, 1)),
            resident((HIDDEN2, HIDDEN1)), resident((HIDDEN2, 1)),
            resident((OUT, HIDDEN2)), resident((OUT, 1)),
        ],
        out_specs=pl.BlockSpec((1, 1, tile_b), lambda i: (i, 0, 0)),
        compiler_params=pltpu.CompilerParams(
            dimension_semantics=("parallel",),  # shard batch tiles across TCs (v7x)
        ),
    )(x, w1, b1, w2, b2, w3, b3)

    # (num_tiles, 1, tile_b) row-major == batch order; drop padding, restore (B, 1).
    return out.reshape(b_pad)[:B].reshape(B, OUT)


def init_params(key):
    """Deterministic init, PyTorch layout: W is (out_features, in_features)."""
    ks = jax.random.split(key, 6)

    def u(k, shape, fan_in):
        bound = 1.0 / jnp.sqrt(fan_in)
        return jax.random.uniform(k, shape, jnp.float32, -bound, bound)

    return {
        "w1": u(ks[0], (HIDDEN1, NUM_FEATURES), NUM_FEATURES),
        "b1": u(ks[1], (HIDDEN1,), NUM_FEATURES),
        "w2": u(ks[2], (HIDDEN2, HIDDEN1), HIDDEN1),
        "b2": u(ks[3], (HIDDEN2,), HIDDEN1),
        "w3": u(ks[4], (OUT, HIDDEN2), HIDDEN2),
        "b3": u(ks[5], (OUT,), HIDDEN2),
    }


def reference_forward(x, params):
    h1 = jnp.maximum(x @ params["w1"].T + params["b1"], 0.0)
    h2 = jnp.maximum(h1 @ params["w2"].T + params["b2"], 0.0)
    return jax.nn.sigmoid(h2 @ params["w3"].T + params["b3"])


if __name__ == "__main__":
    key = jax.random.PRNGKey(0)
    k_param, k_x, k_x2 = jax.random.split(key, 3)
    params = init_params(k_param)

    # Small demo batch (single tile).
    x = jax.random.normal(k_x, (8, NUM_FEATURES), jnp.float32)
    out = jax.block_until_ready(simple_nn_forward(x, params, max_tile_b=MAX_TILE_B))
    ref = reference_forward(x, params)
    assert out.shape == (8, OUT)
    assert jnp.allclose(out, ref, atol=2e-5, rtol=2e-5)

    # Exercise padding + multi-tile pipelined grid (300 -> padded 384, 3 tiles of 128).
    x2 = jax.random.normal(k_x2, (300, NUM_FEATURES), jnp.float32)
    out2 = jax.block_until_ready(simple_nn_forward(x2, params, max_tile_b=128))
    ref2 = reference_forward(x2, params)
    assert out2.shape == (300, OUT)
    assert jnp.allclose(out2, ref2, atol=2e-5, rtol=2e-5)

    print("KERNEL_OK")
</pallas_src>

<mosaic_0001>
module attributes {stable_mosaic.version = 11 : i64} {
  func.func @mlp_kernel(%arg0: i32, %arg1: memref<8x32xf32, #tpu.memory_space<vmem>>, %arg2: memref<16x32xf32, #tpu.memory_space<vmem>>, %arg3: memref<16x1xf32, #tpu.memory_space<vmem>>, %arg4: memref<16x16xf32, #tpu.memory_space<vmem>>, %arg5: memref<16x1xf32, #tpu.memory_space<vmem>>, %arg6: memref<1x16xf32, #tpu.memory_space<vmem>>, %arg7: memref<1x1xf32, #tpu.memory_space<vmem>>, %arg8: memref<1x1x8xf32, #tpu.memory_space<vmem>>) attributes {dimension_semantics = [#tpu.dimension_semantics<parallel>], iteration_bounds = array<i64: 1>, scalar_prefetch = 0 : i64, scratch_operands = 0 : i64, tpu.core_type = #tpu.core_type<tc>, window_params = [{transform_indices = @transform_0, window_bounds = array<i64: 8, 32>}, {pipeline_mode = #tpu.pipeline_mode<synchronous>, transform_indices = @transform_1, window_bounds = array<i64: 16, 32>}, {pipeline_mode = #tpu.pipeline_mode<synchronous>, transform_indices = @transform_2, window_bounds = array<i64: 16, 1>}, {pipeline_mode = #tpu.pipeline_mode<synchronous>, transform_indices = @transform_3, window_bounds = array<i64: 16, 16>}, {pipeline_mode = #tpu.pipeline_mode<synchronous>, transform_indices = @transform_4, window_bounds = array<i64: 16, 1>}, {pipeline_mode = #tpu.pipeline_mode<synchronous>, transform_indices = @transform_5, window_bounds = array<i64: 1, 16>}, {pipeline_mode = #tpu.pipeline_mode<synchronous>, transform_indices = @transform_6, window_bounds = array<i64: 1, 1>}, {transform_indices = @transform_7, window_bounds = array<i64: 1, 1, 8>}]} {
    %c0 = arith.constant 0 : index
    %c0_0 = arith.constant 0 : index
    %0 = vector.load %arg1[%c0, %c0_0] : memref<8x32xf32, #tpu.memory_space<vmem>>, vector<8x32xf32>
    %1 = tpu.transpose %0, [1, 0] : vector<8x32xf32> -> vector<32x8xf32>
    %c0_1 = arith.constant 0 : index
    %c0_2 = arith.constant 0 : index
    %2 = vector.load %arg2[%c0_1, %c0_2] : memref<16x32xf32, #tpu.memory_space<vmem>>, vector<16x32xf32>
    %cst = arith.constant dense<0.000000e+00> : vector<16x8xf32>
    %3 = tpu.matmul %2, %1, %cst {dimension_numbers = #tpu.dot_dimension_numbers<[1], [0], [0], [1], [0, 0, 1, 1], [], []>} : vector<16x32xf32>, vector<32x8xf32>, vector<16x8xf32> -> vector<16x8xf32>
    %c0_3 = arith.constant 0 : index
    %c0_4 = arith.constant 0 : index
    %4 = vector.load %arg3[%c0_3, %c0_4] : memref<16x1xf32, #tpu.memory_space<vmem>>, vector<16x1xf32>
    %5 = vector.broadcast %4 : vector<16x1xf32> to vector<16x8xf32>
    %6 = arith.addf %3, %5 : vector<16x8xf32>
    %cst_5 = arith.constant 0.000000e+00 : f32
    %7 = vector.broadcast %cst_5 : f32 to vector<16x8xf32>
    %8 = arith.maximumf %6, %7 : vector<16x8xf32>
    %c0_6 = arith.constant 0 : index
    %c0_7 = arith.constant 0 : index
    %9 = vector.load %arg4[%c0_6, %c0_7] : memref<16x16xf32, #tpu.memory_space<vmem>>, vector<16x16xf32>
    %cst_8 = arith.constant dense<0.000000e+00> : vector<16x8xf32>
    %10 = tpu.matmul %9, %8, %cst_8 {dimension_numbers = #tpu.dot_dimension_numbers<[1], [0], [0], [1], [0, 0, 1, 1], [], []>} : vector<16x16xf32>, vector<16x8xf32>, vector<16x8xf32> -> vector<16x8xf32>
    %c0_9 = arith.constant 0 : index
    %c0_10 = arith.constant 0 : index
    %11 = vector.load %arg5[%c0_9, %c0_10] : memref<16x1xf32, #tpu.memory_space<vmem>>, vector<16x1xf32>
    %12 = vector.broadcast %11 : vector<16x1xf32> to vector<16x8xf32>
    %13 = arith.addf %10, %12 : vector<16x8xf32>
    %cst_11 = arith.constant 0.000000e+00 : f32
    %14 = vector.broadcast %cst_11 : f32 to vector<16x8xf32>
    %15 = arith.maximumf %13, %14 : vector<16x8xf32>
    %c0_12 = arith.constant 0 : index
    %c0_13 = arith.constant 0 : index
    %16 = vector.load %arg6[%c0_12, %c0_13] : memref<1x16xf32, #tpu.memory_space<vmem>>, vector<1x16xf32>
    %cst_14 = arith.constant dense<0.000000e+00> : vector<1x8xf32>
    %17 = tpu.matmul %16, %15, %cst_14 {dimension_numbers = #tpu.dot_dimension_numbers<[1], [0], [0], [1], [0, 0, 1, 1], [], []>} : vector<1x16xf32>, vector<16x8xf32>, vector<1x8xf32> -> vector<1x8xf32>
    %c0_15 = arith.constant 0 : index
    %c0_16 = arith.constant 0 : index
    %18 = vector.load %arg7[%c0_15, %c0_16] : memref<1x1xf32, #tpu.memory_space<vmem>>, vector<1x1xf32>
    %19 = vector.broadcast %18 : vector<1x1xf32> to vector<1x8xf32>
    %20 = arith.addf %17, %19 : vector<1x8xf32>
    %cst_17 = arith.constant 5.000000e-01 : f32
    %21 = vector.broadcast %cst_17 : f32 to vector<1x8xf32>
    %22 = arith.mulf %21, %20 : vector<1x8xf32>
    %23 = math.tanh %22 : vector<1x8xf32>
    %cst_18 = arith.constant 1.000000e+00 : f32
    %24 = vector.broadcast %cst_18 : f32 to vector<1x8xf32>
    %25 = arith.addf %23, %24 : vector<1x8xf32>
    %cst_19 = arith.constant 5.000000e-01 : f32
    %26 = vector.broadcast %cst_19 : f32 to vector<1x8xf32>
    %27 = arith.mulf %26, %25 : vector<1x8xf32>
    %c0_20 = arith.constant 0 : index
    %c0_21 = arith.constant 0 : index
    %c0_22 = arith.constant 0 : index
    %28 = vector.load %arg8[%c0_20, %c0_21, %c0_22] : memref<1x1x8xf32, #tpu.memory_space<vmem>>, vector<1x1x8xf32>
    %29 = vector.shape_cast %28 : vector<1x1x8xf32> to vector<1x8xf32>
    %30 = vector.shape_cast %27 : vector<1x8xf32> to vector<1x1x8xf32>
    tpu.vector_store %arg8[%c0_20, %c0_21, %c0_22], %30 {strides = array<i32>} : memref<1x1x8xf32, #tpu.memory_space<vmem>>, vector<1x1x8xf32>,
    return
  }
  func.func @transform_0(%arg0: i32) -> (i32, i32) {
    %c0_i32 = arith.constant 0 : i32
    %c0_i32_0 = arith.constant 0 : i32
    return %arg0, %c0_i32 : i32, i32
  }
  func.func @transform_1(%arg0: i32) -> (i32, i32) {
    %c0_i32 = arith.constant 0 : i32
    %c0_i32_0 = arith.constant 0 : i32
    %c0_i32_1 = arith.constant 0 : i32
    return %c0_i32, %c0_i32_0 : i32, i32
  }
  func.func @transform_2(%arg0: i32) -> (i32, i32) {
    %c0_i32 = arith.constant 0 : i32
    %c0_i32_0 = arith.constant 0 : i32
    %c0_i32_1 = arith.constant 0 : i32
    return %c0_i32, %c0_i32_0 : i32, i32
  }
  func.func @transform_3(%arg0: i32) -> (i32, i32) {
    %c0_i32 = arith.constant 0 : i32
    %c0_i32_0 = arith.constant 0 : i32
    %c0_i32_1 = arith.constant 0 : i32
    return %c0_i32, %c0_i32_0 : i32, i32
  }
  func.func @transform_4(%arg0: i32) -> (i32, i32) {
    %c0_i32 = arith.constant 0 : i32
    %c0_i32_0 = arith.constant 0 : i32
    %c0_i32_1 = arith.constant 0 : i32
    return %c0_i32, %c0_i32_0 : i32, i32
  }
  func.func @transform_5(%arg0: i32) -> (i32, i32) {
    %c0_i32 = arith.constant 0 : i32
    %c0_i32_0 = arith.constant 0 : i32
    %c0_i32_1 = arith.constant 0 : i32
    return %c0_i32, %c0_i32_0 : i32, i32
  }
  func.func @transform_6(%arg0: i32) -> (i32, i32) {
    %c0_i32 = arith.constant 0 : i32
    %c0_i32_0 = arith.constant 0 : i32
    %c0_i32_1 = arith.constant 0 : i32
    return %c0_i32, %c0_i32_0 : i32, i32
  }
  func.func @transform_7(%arg0: i32) -> (i32, i32, i32) {
    %c0_i32 = arith.constant 0 : i32
    %c0_i32_0 = arith.constant 0 : i32
    %c0_i32_1 = arith.constant 0 : i32
    return %arg0, %c0_i32, %c0_i32_0 : i32, i32, i32
  }
}

</mosaic_0001>

<bundles_post_ra>
// kernel: simple_nn_forward.1
= control target key start
LH: loop header
LB: loop body
LE: loop exit
PB: predicated region body
PF: predicated region fallthrough
CT: control target
= control target key end

     0   :  { %s501_s0 = inlined_call_operand.vmem [shape: f32[8,32], index: 0, kind: input, shape index: {}]   ;;  %s502_s1 = inlined_call_operand.vmem [shape: f32[16,32], index: 1, kind: input, shape index: {}]   ;;  %s503_s2 = inlined_call_operand.vmem [shape: f32[16,1], index: 2, kind: input, shape index: {}]   ;;  %s504_s3 = inlined_call_operand.vmem [shape: f32[16,16], index: 3, kind: input, shape index: {}]   ;;  %s505_s4 = inlined_call_operand.vmem [shape: f32[16,1], index: 4, kind: input, shape index: {}]   ;;  %s506_s5 = inlined_call_operand.vmem [shape: f32[1,16], index: 5, kind: input, shape index: {}]   ;;  %s507_s6 = inlined_call_operand.<no memory space> [shape: f32[1,1], index: 6, kind: input, shape index: {}]   ;;  %s508_s7 = inlined_call_operand.hbm [shape: f32[1,1,8], index: 7, kind: output, shape index: {}]  }
   0x1   :  { %v12_v0 = vstv %s507_s6 }
   0x2   :  { %13 = vst [vmem:[#allocation2] sm:$0x1] %v12_v0 }
   0x3   :  { %v29_v1 = vld [vmem:[%s501_s0] sm:$0xff]  ;;  %vm44_vm0 = vcmask 261120   ;;  %v31_v4 = vld [vmem:[%s502_s1 + $0x8] sm:$0xff]  ;;  %v408_v5 = vmov 0  }
   0x4   :  { %v30_v2 = vld [vmem:[%s502_s1] sm:$0xff]  ;;  %349 = vmatprep.subr.msk.mxu0 %vm44_vm0, %v29_v1  ;;  %380 = vset.pattern.permute.xlu0 %v408_v5 }
   0x5   :  { %351 = vmatprep.mubr.msk.f32.mxu0 %vm44_vm0, %v30_v2  ;;  %v32_v3 = vld [vmem:[%s503_s2] sm:$0xff]  ;;  %350 = vmatpush3.xpose.msk.msra.mxu0 %vm44_vm0, %v29_v1 }
   0x6   :  { %14 = vsyncpa [#allocation4], 0  ;;  %36 = vperm.xlu0 %380, %v32_v3   ;;  %381 = vset.pattern.permute.xlu1 %v408_v5  ;;  %v33_v6 = vld [vmem:[%s503_s2 + $0x8] sm:$0xff]  ;;  %v131_v8 = vld [vmem:[%s504_s3] sm:$0xff]  ;;  %vm145_vm1 = vcmask 130048   ;;  %v409_v21 = vmov 0.0|0.0   ;;  %v236_v33 = vlaneseq }
   0x7   :  { %358 = vmatprep.mubr.msk.f32.mxu1 %vm145_vm1, %v131_v8  ;;  %v133_v9 = vld [vmem:[%s505_s4] sm:$0xff]  ;;  %v134_v10 = vld [vmem:[%s505_s4 + $0x8] sm:$0xff]  ;;  %372 = vmatprep.subr.bf16.mxu0 %v409_v21  ;;  %vm410_vm2 = vmmov 0   ;;  %v411_v22 = vmov 0.0   ;;  %vm317_vm3 = vcmask 57344  }
   0x8   :  { %352 = vmatmul.mubr.msk.f32.vlgmr.msra.gmra.mrb[0].mxu0 %vm44_vm0, %v31_v4  ;;  %137 = vperm.xlu1 %381, %v133_v9   ;;  %v132_v20 = vld [vmem:[%s504_s3 + $0x8] sm:$0xff]  ;;  %v229_v32 = vld [vmem:[%s506_s5] sm:$0x1]  ;;  %v237_v34 = vshrl.u32 %v236_v33, 7  ;;  %s412_s3 = smov [#allocation3]  }
   0x9   :  { %v230_v7 = vld [vmem:[#allocation2] sm:$0x1]  ;;  %365 = vmatprep.mubr.msk.f32.mxu0 %vm410_vm2, %v411_v22  ;;  %s325_s18 = sshll.u32 %s412_s3, 4  ;;  %s326_s18 = int_to_ptr.vmem [resolvable:$true] %s325_s18 }
   0xa   :  { %41 = vperm.xlu0 %380, %v33_v6   ;;  %v238_v35 = vsub.s32 0, %v237_v34  ;;  %s384_s5 = scalar_lea.vmem %s326_s18, 16  ;;  %s388_s19 = scalar_lea.vmem %s326_s18, 32 }
   0xb   :  { %p385_p0 = scmp.ne.s32.totalorder %s326_s18, %s384_s5  ;;  %p389_p1 = scmp.lt.s32.totalorder %s326_s18, %s326_s18 }
   0xc   :  { %142 = vperm.xlu1 %381, %v134_v10   ;;  %p390_p2 = scmp.lt.s32.totalorder %s388_s19, %s384_s5 }
   0xe   :  { %233 = vperm.xlu0 %380, %v230_v7   ;;  %p391_p3 = por %p390_p2, %p389_p1 }
  0x10   :  { %p392_p4 = pnand %p391_p3, %p385_p0 }
  0x85   :  { %v37_v11 = vpop.permute.xlu0 %36 }
  0x87   :  { %v138_v23 = vpop.permute.xlu1 %137 }
  0x89   :  { %v42_v12 = vpop.permute.xlu0 %41 }
  0x8b   :  { %v143_v24 = vpop.permute.xlu1 %142 }
  0x8d   :  { %v234_v36 = vpop.permute.xlu0 %233 }
  0x8e   :  { %v239_v37 = vrot.slane %v234_v36, %v238_v35 }
  0xdb   :  { %v353_v13 = vpop.f32.mrb[0].mxu0 }
  0xdc   :  { %v126_v14 = vadd.f32 %v353_v13, %v42_v12  ;;  %v120_v15 = vpop.f32.mrb[1].mxu0 }
  0xdd   :  { %v121_v16 = vadd.f32 %v120_v15, %v37_v11 }
  0xde   :  { %v130_v17 = vmax.f32 %v126_v14, 0.0 }
  0xdf   :  { %v129_v18 = vmax.f32 %v121_v16, 0.0 }
  0xe1   :  { %v368_v19 = vpack.c.bf16 %v130_v17, %v129_v18 }
  0xe3   :  { %369 = vmatprep.subr.bf16.mxu1 %v368_v19 }
  0xe4   :  { %371 = vmatpush3.bf16.msra.mxu1 %v368_v19 }
  0xe7   :  { %359 = vmatmul.mubr.msk.f32.vlgmr.msra.gmra.mrb[0].mxu1 %vm145_vm1, %v132_v20 }
 0x1ba   :  { %v360_v25 = vpop.f32.mrb[0].mxu1 }
 0x1bb   :  { %v224_v26 = vadd.f32 %v360_v25, %v143_v24  ;;  %v218_v27 = vpop.f32.mrb[1].mxu1 }
 0x1bc   :  { %v219_v28 = vadd.f32 %v218_v27, %v138_v23 }
 0x1bd   :  { %v228_v29 = vmax.f32 %v224_v26, 0.0 }
 0x1be   :  { %v227_v30 = vmax.f32 %v219_v28, 0.0 }
 0x1c0   :  { %v373_v31 = vpack.c.bf16 %v228_v29, %v227_v30 }
 0x1c2   :  { %374 = vmatpush3.bf16.msra.mxu0 %v373_v31 }
 0x1c5   :  { %366 = vmatmul.mubr.msk.f32.vlgmr.msra.gmra.mrb[2].mxu0 %vm145_vm1, %v229_v32 }
 0x298   :  { %v309_v38 = vpop.f32.mrb[2].mxu0 }
 0x299   :  { %v310_v39 = vadd.f32 %v309_v38, %v239_v37  ;;  %v367_v40 = vpop.f32.mrb[3].mxu0 }
 0x29b   :  { %v313_v41 = vmul.f32 0.5, %v310_v39 }
 0x29d   :  { %382 = vtanh.f32 %v313_v41 }
 0x2a7   :  { %v383_v42 = vpop.eup %382 }
 0x2a8   :  { %v315_v43 = vadd.f32 1.0, %v383_v42 }
 0x2aa   :  { %v316_v44 = vmul.f32 0.5, %v315_v43 }
 0x2ac   :  { %318 = vst.msk [vmem:[#allocation3] sm:$0x1] %vm317_vm3, %v316_v44 }
 0x2ad   :  { %395 = shalt.err (!%p392_p4)
}
 0x2ae   :  { %s396_s22 = scalar_lea.hbm %s508_s7, 16 }
 0x2af   :  { %p397_p5 = scmp.ne.s32.totalorder %s508_s7, %s396_s22  ;;  %p400_p6 = scmp.lt.u32.totalorder %s396_s22, %s508_s7 }
 0x2b1   :  { %p402_p7 = pnand %p400_p6, %p397_p5 }
 0x2b3   :  { %405 = shalt.err (!%p402_p7)
}
 0x2b4   :  { %328 = dma.vmem_to_hbm [thread:$0]  %s326_s18, 16, %s508_s7, [#allocation4]  }
 0x2b5   :  { %406 = dma.done.wait [#allocation4], 16  }
 0x2b6   :  { %407 = vsyncadd [#allocation4], 4294967280 }
 0x2b7   :  { %332 = vsyncpa [#allocation4], 1 }

</bundles_post_ra>
